<compile_context>
chip_gen: v6e
topology: v6e:2x2x1
jax: 0.10.0
libtpu: 0.0.40
codegen_flags: <defaults>
</compile_context>

<pallas_src>
import functools
import math

import jax
import jax.numpy as jnp
from jax.experimental import pallas as pl
from jax.experimental.pallas import tpu as pltpu


def _arcface_kernel(label_ref, xn_ref, w_ref, invn_ref, out_ref, *,
                    s, cos_m, sin_m, th, mm, easy_margin):
    # label_ref: (tb, 1)  int32 class labels
    # xn_ref:    (tb, D)  pre-normalized input rows (bf16 by default, grid-resident)
    # w_ref:     (D, tc)  RAW weight tile, lane-dense over classes (bf16 by default)
    # invn_ref:  (1, tc)  f32 inverse class norms (precomputed once in the wrapper)
    # out_ref:   (tb, tc) f32 logits tile
    xn = xn_ref[...]
    w = w_ref[...]
    if w.dtype != xn.dtype:
        # fp8 weight streaming path (v7x): upcast tile to the MXU input dtype.
        w = w.astype(xn.dtype)

    # Raw-tile NN matmul on the MXU; per-class normalization commutes with the
    # dot, so it is applied as a cheap (tb, tc) scale with exact f32 inv norms.
    cosine = jax.lax.dot_general(
        xn, w, (((1,), (0,)), ((), ())),
        preferred_element_type=jnp.float32) * invn_ref[...]

    # clamp only guards |cosine| > 1 from fp rounding (torch would NaN there).
    sine = jnp.sqrt(jnp.maximum(1.0 - cosine * cosine, 0.0))
    phi = cosine * cos_m - sine * sin_m
    if easy_margin:
        phi = jnp.where(cosine > 0.0, phi, cosine)
    else:
        phi = jnp.where(cosine > th, phi, cosine - mm)

    tb, tc = out_ref.shape
    # one_hot.scatter_(1, label, 1): local column iota vs (label - tile offset).
    label_local = label_ref[...] - pl.program_id(0) * tc            # (tb, 1)
    col = jax.lax.broadcasted_iota(jnp.int32, (tb, tc), 1)
    one_hot = col == label_local

    out_ref[...] = jnp.where(one_hot, phi, cosine) * s


def _vmem_capacity_bytes():
    """Physical per-core VMEM (generation-aware), with a conservative fallback."""
    try:
        cap = int(getattr(pltpu.get_tpu_info(), "vmem_capacity_bytes",
                          64 * 1024 * 1024))
    except Exception:
        cap = 64 * 1024 * 1024                     # v7x-level conservative default
    return min(max(cap, 16 * 1024 * 1024), 128 * 1024 * 1024)


def _pick_class_tile(C, D, tb, wbytes, xbytes, budget_bytes):
    """Largest 128-aligned class tile whose full VMEM footprint fits the budget."""
    # Grid-resident buffers (double-buffered by the pipeliner): normalized x + labels.
    resident = 2 * tb * D * xbytes + 2 * tb * 4
    # Per class column: double-buffered weight tile + double-buffered f32 output
    # tile + inv-norm row + ~3 live (tb,) f32 intermediates (cosine/sine/phi).
    per_class = 2 * D * wbytes + 2 * tb * 4 + 2 * 4 + 3 * tb * 4
    avail = max(budget_bytes - resident, 128 * per_class)
    tc = max(128, (int(avail // per_class) // 128) * 128)
    c_up = ((C + 127) // 128) * 128
    tc = min(tc, c_up)
    # Keep >= 2 class tiles whenever C allows it (v7x has 2 TensorCores to feed).
    if c_up >= 256:
        tc = min(tc, max(128, ((c_up // 2) // 128) * 128))
    return tc


def arcface_forward(x, weight, label, *, s=64.0, m=0.5, easy_margin=False,
                    weight_dtype=jnp.bfloat16, batch_tile=256):
    """x: (B, D) float; weight: (C, D) float (PyTorch layout); label: (B,) int."""
    B, D = x.shape
    C, D2 = weight.shape
    assert D == D2

    weight_dtype = jnp.dtype(weight_dtype)
    compute_dtype = (jnp.float32 if weight_dtype == jnp.dtype(jnp.float32)
                     else jnp.bfloat16)

    # --- Hoisted (once-per-call) preprocessing ------------------------------
    # F.normalize(input): exact f32, done once outside the class-tile loop.
    x32 = x.astype(jnp.float32)
    xn = x32 / jnp.maximum(
        jnp.sqrt(jnp.sum(x32 * x32, axis=-1, keepdims=True)), 1e-12)
    xn = xn.astype(compute_dtype)

    # Inverse class norms in exact f32 (normalization commutes with the matmul).
    w32 = weight.astype(jnp.float32)
    inv_norm = 1.0 / jnp.maximum(
        jnp.sqrt(jnp.sum(w32 * w32, axis=-1)), 1e-12)              # (C,)

    # Pre-transpose to (D, C): lane-dense over classes, canonical NN matmul;
    # streamed in bf16 by default (fp8 allowed on v7x: the scale cancels in the
    # normalized cosine so no extra in-kernel math is needed).
    wt = weight.T.astype(weight_dtype)

    # --- Tiling / VMEM budgeting --------------------------------------------
    tb = B if B <= batch_tile else batch_tile                      # tb==B or mult. of 8
    cap = _vmem_capacity_bytes()
    vmem_limit = (cap * 3) // 4                                    # >=25% headroom
    tile_budget = cap // 2
    tc = _pick_class_tile(C, D, tb, weight_dtype.itemsize,
                          jnp.dtype(compute_dtype).itemsize, tile_budget)

    C_pad = ((C + tc - 1) // tc) * tc
    B_pad = ((B + tb - 1) // tb) * tb

    if C_pad != C:                      # zero class columns: cosine==0, sliced off
        wt = jnp.pad(wt, ((0, 0), (0, C_pad - C)))
        inv_norm = jnp.pad(inv_norm, (0, C_pad - C))
    inv_norm = inv_norm.reshape(1, C_pad)

    label2 = label.reshape(B, 1).astype(jnp.int32)
    if B_pad != B:                      # zero rows: harmless, sliced off
        xn = jnp.pad(xn, ((0, B_pad - B), (0, 0)))
        label2 = jnp.pad(label2, ((0, B_pad - B), (0, 0)))

    kernel = functools.partial(
        _arcface_kernel, s=float(s), cos_m=math.cos(m), sin_m=math.sin(m),
        th=math.cos(math.pi - m), mm=math.sin(math.pi - m) * m,
        easy_margin=easy_margin)

    out = pl.pallas_call(
        kernel,
        out_shape=jax.ShapeDtypeStruct((B_pad, C_pad), jnp.float32),
        grid_spec=pltpu.PrefetchScalarGridSpec(
            num_scalar_prefetch=0,
            # class axis OUTER, batch INNER: the dominant weight-tile DMA stays
            # resident across batch steps.
            grid=(C_pad // tc, B_pad // tb),
            in_specs=[
                pl.BlockSpec((tb, 1), lambda j, i: (i, 0)),    # labels
                pl.BlockSpec((tb, D), lambda j, i: (i, 0)),    # normalized x
                pl.BlockSpec((D, tc), lambda j, i: (0, j)),    # weight tile
                pl.BlockSpec((1, tc), lambda j, i: (0, j)),    # inv class norms
            ],
            out_specs=pl.BlockSpec((tb, tc), lambda j, i: (i, j)),
        ),
        compiler_params=pltpu.CompilerParams(
            dimension_semantics=("parallel", "parallel"),
            vmem_limit_bytes=int(vmem_limit)),
    )(label2, xn, wt, inv_norm)

    if B_pad != B or C_pad != C:
        out = out[:B, :C]
    return out


def arcface_reference(x, weight, label, *, s=64.0, m=0.5, easy_margin=False):
    xn = x / jnp.maximum(jnp.linalg.norm(x, axis=-1, keepdims=True), 1e-12)
    wn = weight / jnp.maximum(jnp.linalg.norm(weight, axis=-1, keepdims=True), 1e-12)
    cosine = xn @ wn.T
    sine = jnp.sqrt(jnp.maximum(1.0 - cosine * cosine, 0.0))
    phi = cosine * math.cos(m) - sine * math.sin(m)
    if easy_margin:
        phi = jnp.where(cosine > 0.0, phi, cosine)
    else:
        phi = jnp.where(cosine > math.cos(math.pi - m), phi,
                        cosine - math.sin(math.pi - m) * m)
    one_hot = jax.nn.one_hot(label, weight.shape[0], dtype=cosine.dtype)
    return (one_hot * phi + (1.0 - one_hot) * cosine) * s


if __name__ == "__main__":
    key = jax.random.PRNGKey(0)
    kx, kw, kl, kx2, kw2, kl2 = jax.random.split(key, 6)

    # Small shapes consistent with the module: batch=8, in_features=32, classes=256.
    B, D, C = 8, 32, 256
    x = jax.random.normal(kx, (B, D), dtype=jnp.float32)
    bound = math.sqrt(6.0 / (D + C))                     # xavier_uniform_ on (C, D)
    weight = jax.random.uniform(kw, (C, D), jnp.float32, -bound, bound)
    label = jax.random.randint(kl, (B,), 0, C, dtype=jnp.int32)

    ref = arcface_reference(x, weight, label)

    # f32 weight streaming: tight check of the exact module semantics.
    out_f32 = jax.block_until_ready(
        arcface_forward(x, weight, label, weight_dtype=jnp.float32))
    assert out_f32.shape == (B, C)
    assert jnp.allclose(out_f32, ref, rtol=2e-3, atol=2e-2), "f32 mismatch"

    # Default path: bf16 weight/activation streaming straight into the MXU.
    out_bf16 = jax.block_until_ready(arcface_forward(x, weight, label))
    assert out_bf16.shape == (B, C)
    assert jnp.allclose(out_bf16, ref, rtol=2e-2, atol=5e-1), "bf16 mismatch"

    # Ragged shapes: exercises class padding (C=200 -> 256) and the batch grid
    # axis with row padding (B=20, batch_tile=8 -> B_pad=24, grid=(2, 3)).
    B2, C2 = 20, 200
    x2 = jax.random.normal(kx2, (B2, D), dtype=jnp.float32)
    bound2 = math.sqrt(6.0 / (D + C2))
    weight2 = jax.random.uniform(kw2, (C2, D), jnp.float32, -bound2, bound2)
    label2 = jax.random.randint(kl2, (B2,), 0, C2, dtype=jnp.int32)
    ref2 = arcface_reference(x2, weight2, label2)
    out2 = jax.block_until_ready(
        arcface_forward(x2, weight2, label2, weight_dtype=jnp.float32,
                        batch_tile=8))
    assert out2.shape == (B2, C2)
    assert jnp.allclose(out2, ref2, rtol=2e-3, atol=2e-2), "ragged/tiled mismatch"

    print("KERNEL_OK")
</pallas_src>

<mosaic_0001>
module attributes {stable_mosaic.version = 11 : i64} {
  func.func @_arcface_kernel(%arg0: i32, %arg1: i32, %arg2: memref<8x1xi32, #tpu.memory_space<vmem>>, %arg3: memref<8x32xf32, #tpu.memory_space<vmem>>, %arg4: memref<32x128xf32, #tpu.memory_space<vmem>>, %arg5: memref<1x128xf32, #tpu.memory_space<vmem>>, %arg6: memref<8x128xf32, #tpu.memory_space<vmem>>) attributes {dimension_semantics = [#tpu.dimension_semantics<parallel>, #tpu.dimension_semantics<parallel>], iteration_bounds = array<i64: 2, 1>, scalar_prefetch = 0 : i64, scratch_operands = 0 : i64, tpu.core_type = #tpu.core_type<tc>, window_params = [{transform_indices = @transform_0, window_bounds = array<i64: 8, 1>}, {transform_indices = @transform_1, window_bounds = array<i64: 8, 32>}, {transform_indices = @transform_2, window_bounds = array<i64: 32, 128>}, {transform_indices = @transform_3, window_bounds = array<i64: 1, 128>}, {transform_indices = @transform_4, window_bounds = array<i64: 8, 128>}]} {
    %c0 = arith.constant 0 : index
    %c0_0 = arith.constant 0 : index
    %0 = vector.load %arg3[%c0, %c0_0] : memref<8x32xf32, #tpu.memory_space<vmem>>, vector<8x32xf32>
    %c0_1 = arith.constant 0 : index
    %c0_2 = arith.constant 0 : index
    %1 = vector.load %arg4[%c0_1, %c0_2] : memref<32x128xf32, #tpu.memory_space<vmem>>, vector<32x128xf32>
    %cst = arith.constant dense<0.000000e+00> : vector<8x128xf32>
    %2 = tpu.matmul %0, %1, %cst {dimension_numbers = #tpu.dot_dimension_numbers<[1], [0], [0], [1], [0, 0, 1, 1], [], []>} : vector<8x32xf32>, vector<32x128xf32>, vector<8x128xf32> -> vector<8x128xf32>
    %c0_3 = arith.constant 0 : index
    %c0_4 = arith.constant 0 : index
    %3 = vector.load %arg5[%c0_3, %c0_4] : memref<1x128xf32, #tpu.memory_space<vmem>>, vector<1x128xf32>
    %4 = vector.broadcast %3 : vector<1x128xf32> to vector<8x128xf32>
    %5 = arith.mulf %2, %4 : vector<8x128xf32>
    %6 = arith.mulf %5, %5 : vector<8x128xf32>
    %cst_5 = arith.constant 1.000000e+00 : f32
    %7 = vector.broadcast %cst_5 : f32 to vector<8x128xf32>
    %8 = arith.subf %7, %6 : vector<8x128xf32>
    %cst_6 = arith.constant 0.000000e+00 : f32
    %9 = vector.broadcast %cst_6 : f32 to vector<8x128xf32>
    %10 = arith.maximumf %8, %9 : vector<8x128xf32>
    %11 = math.sqrt %10 : vector<8x128xf32>
    %cst_7 = arith.constant 0.87758255 : f32
    %12 = vector.broadcast %cst_7 : f32 to vector<8x128xf32>
    %13 = arith.mulf %5, %12 : vector<8x128xf32>
    %cst_8 = arith.constant 0.47942555 : f32
    %14 = vector.broadcast %cst_8 : f32 to vector<8x128xf32>
    %15 = arith.mulf %11, %14 : vector<8x128xf32>
    %16 = arith.subf %13, %15 : vector<8x128xf32>
    %cst_9 = arith.constant -0.87758255 : f32
    %17 = vector.broadcast %cst_9 : f32 to vector<8x128xf32>
    %18 = arith.cmpf ogt, %5, %17 : vector<8x128xf32>
    %cst_10 = arith.constant 0.239712775 : f32
    %19 = vector.broadcast %cst_10 : f32 to vector<8x128xf32>
    %20 = arith.subf %5, %19 : vector<8x128xf32>
    %21 = arith.select %18, %16, %20 : vector<8x128xi1>, vector<8x128xf32>
    %c0_11 = arith.constant 0 : index
    %c0_12 = arith.constant 0 : index
    %22 = vector.load %arg2[%c0_11, %c0_12] : memref<8x1xi32, #tpu.memory_space<vmem>>, vector<8x1xi32>
    %c128_i32 = arith.constant 128 : i32
    %23 = arith.muli %arg0, %c128_i32 : i32
    %24 = vector.broadcast %23 : i32 to vector<8x1xi32>
    %25 = arith.subi %22, %24 : vector<8x1xi32>
    %26 = tpu.iota {dimensions = array<i32: 1>} : vector<8x128xi32>
    %27 = vector.broadcast %25 : vector<8x1xi32> to vector<8x128xi32>
    %28 = arith.cmpi eq, %26, %27 : vector<8x128xi32>
    %29 = arith.select %28, %21, %5 : vector<8x128xi1>, vector<8x128xf32>
    %cst_13 = arith.constant 6.400000e+01 : f32
    %30 = vector.broadcast %cst_13 : f32 to vector<8x128xf32>
    %31 = arith.mulf %29, %30 : vector<8x128xf32>
    %c0_14 = arith.constant 0 : index
    %c0_15 = arith.constant 0 : index
    %32 = vector.load %arg6[%c0_14, %c0_15] : memref<8x128xf32, #tpu.memory_space<vmem>>, vector<8x128xf32>
    tpu.vector_store %arg6[%c0_14, %c0_15], %31 {strides = array<i32>} : memref<8x128xf32, #tpu.memory_space<vmem>>, vector<8x128xf32>,
    return
  }
  func.func @transform_0(%arg0: i32, %arg1: i32) -> (i32, i32) {
    %c0_i32 = arith.constant 0 : i32
    %c0_i32_0 = arith.constant 0 : i32
    return %arg1, %c0_i32 : i32, i32
  }
  func.func @transform_1(%arg0: i32, %arg1: i32) -> (i32, i32) {
    %c0_i32 = arith.constant 0 : i32
    %c0_i32_0 = arith.constant 0 : i32
    return %arg1, %c0_i32 : i32, i32
  }
  func.func @transform_2(%arg0: i32, %arg1: i32) -> (i32, i32) {
    %c0_i32 = arith.constant 0 : i32
    %c0_i32_0 = arith.constant 0 : i32
    return %c0_i32, %arg0 : i32, i32
  }
  func.func @transform_3(%arg0: i32, %arg1: i32) -> (i32, i32) {
    %c0_i32 = arith.constant 0 : i32
    %c0_i32_0 = arith.constant 0 : i32
    return %c0_i32, %arg0 : i32, i32
  }
  func.func @transform_4(%arg0: i32, %arg1: i32) -> (i32, i32) {
    %c0_i32 = arith.constant 0 : i32
    return %arg1, %arg0 : i32, i32
  }
}

</mosaic_0001>

<bundles_post_ra>
// kernel: tpu_custom_call.1
= control target key start
LH: loop header
LB: loop body
LE: loop exit
PB: predicated region body
PF: predicated region fallthrough
CT: control target
= control target key end

     0   :  { %9 = vsyncpa [#allocation3], 0  ;;  %s929_s0 = inlined_call_operand.vmem [shape: s32[8,1], index: 0, kind: input, shape index: {}]   ;;  %s930_s1 = inlined_call_operand.vmem [shape: f32[8,32], index: 1, kind: input, shape index: {}]   ;;  %s931_s2 = inlined_call_operand.hbm [shape: f32[32,256], index: 2, kind: input, shape index: {}]   ;;  %s932_s3 = inlined_call_operand.vmem [shape: f32[1,256], index: 3, kind: input, shape index: {}]   ;;  %s933_s4 = inlined_call_operand.hbm [shape: f32[8,256], index: 4, kind: output, shape index: {}]  }
   0x1   :  { %11 = vsyncpa [#allocation3 + $0x1], 0 }
   0x2   :  { %12 = vsyncpa [#allocation4], 0 }
   0x3   :  { %14 = vsyncpa [#allocation4 + $0x1], 0  ;;  %s777_s15 = smov 0   ;;  %s779_s16 = smov 0  }
   0x4   :  { %s781_s17 = smov 0   ;;  %s783_s18 = smov 0  }
   0x5   :  { %s785_s19 = smov 0   ;;  %s787_s20 = smov 0  }
   0x6 LB: > { %s528_s21 = sadd.s32 4294967295, %s742_s20   ;;  %s529_s22 = sadd.s32 4294967294, %s742_s20   ;;  %s742_s20 = sphi %s787_s20, %s20_s20   ;;  %s738_s19 = sphi %s785_s19, %s944_s19   ;;  %s734_s18 = sphi %s783_s18, %s943_s18   ;;  %s730_s17 = sphi %s781_s17, %s942_s17   ;;  %s726_s16 = sphi %s779_s16, %s941_s16   ;;  %s722_s15 = sphi %s777_s15, %s940_s15  }
   0x7   : > { %s32_s23 = sadd.s32 1, %s738_s19  ;;  %s91_s24 = sadd.s32 1, %s730_s17 }
   0x8   : > { %p34_p0 = scmp.ge.s32.totalorder %s32_s23, 2  ;;  %p98_p1 = scmp.ne.s32.totalorder %s730_s17, %s726_s16 }
   0x9   : > { %p99_p2 = scmp.eq.s32.totalorder %s742_s20, 0  ;;  %p104_p3 = scmp.ne.s32.totalorder %s726_s16, %s722_s15 }
   0xa   : > { %s946_s23 = smov (%p34_p0, %s32_s23), 0  ;;  %p105_p5 = scmp.eq.s32.totalorder %s528_s21, 0 }
   0xb   : > { %p818_p4 = por %p99_p2, %p98_p1  ;;  %s88_s26 = ssub.s32 %s738_s19, %s946_s23 }
   0xc   : > { %p156_p6 = scmp.eq.s32.totalorder %s528_s21, 1  ;;  %p89_p7 = scmp.eq.s32.totalorder %s88_s26, 0 }
   0xd   : > { %p824_p8 = por %p105_p5, %p104_p3  ;;  %p162_p10 = scmp.eq.s32.totalorder %s529_s22, 1 }
   0xe   : > { %p828_p9 = por %p156_p6, %p98_p1  ;;  %p575_p13 = scmp.lt.s32.totalorder %s742_s20, 2 }
   0xf   : > { %s833_s29 = scalar_select %p89_p7, %s730_s17, %s91_s24  }
  0x10   : > { %p835_p11 = por %p162_p10, %p104_p3  ;;  %s196_s5 = sand.u32 1, %s730_s17  }
  0x11   : > { %s534_s6 = sshll.u32 %s196_s5, 5  ;;  %s535_s7 = sshll.u32 %s738_s19, 7 }
  0x12   : > { %s205_s10 = scalar_lea.hbm %s931_s2, %s535_s7  ;;  %s200_s11 = scalar_lea.vmem [#allocation2], %s534_s6 }
  0x13   : > { %s206_s12 = sshll.u32 %s200_s11, 4  ;;  %p848_p0 = pnand %p575_p13, %p818_p4  ;;  %s207_s12 = int_to_ptr.vmem [resolvable:$true] %s206_s12 }
  0x14   : > { %s197_s14 = scalar_lea.sflag [#allocation3], %s196_s5  ;;  %s647_s21 = scalar_lea.vmem %s207_s12, 512 }
  0x15   : > { %p636_p1 = pneg %p848_p0  ;;  %p648_p2 = scmp.ne.s32.totalorder %s207_s12, %s647_s21 }
  0x16   : > { %s744_s22 = smov [#allocation2]  }
  0x17   : > { %p650_p3 = pnand %p648_p2, %p636_p1  ;;  %s652_s24 = sshll.u32 %s744_s22, 4  ;;  %s653_s24 = int_to_ptr.vmem [resolvable:$false] %s652_s24 }
  0x18   : > { %s654_s26 = scalar_lea.vmem %s653_s24, 1024  ;;  %p655_p6 = scmp.lt.s32.totalorder %s207_s12, %s653_s24 }
  0x19   : > { %p651_p5 = pneg %p650_p3  ;;  %p656_p7 = scmp.lt.s32.totalorder %s654_s26, %s647_s21 }
  0x1b   : > { %p657_p10 = por %p656_p7, %p655_p6 }
  0x1d   : > { %p658_p12 = pnand %p657_p10, %p651_p5 }
  0x1f   : > { %661 = shalt.err (!%p658_p12)
}
  0x20   : > { %s745_s25 = smov 256   ;;  %s746_s5 = smov 128  }
  0x21   : > { %s747_s6 = smov 8   ;;  %p536_p4 = scmp.ge.s32.totalorder %s742_s20, 1 }
  0x22   : > { %570 = dma.hbm_to_vmem [thread:$0]  (!%p848_p0), %s205_s10, 512, %s207_s12, %s197_s14, %s745_s25, %s746_s5, %s747_s6  }
  0x23   : > { %p220_p13 = scmp.lt.s32.totalorder %s742_s20, 3 }
  0x25   : > { %p221_p1 = pnand %p536_p4, %p220_p13 }
  0x26   : > { %s859_s7 = sand.u32 (!%p221_p1), 1, %s726_s16  }
  0x27   : > { %224 = sbr.rel (%p221_p1) target bundleno = 294 (0x126), region = 36  ;;  %s537_s8 = sshll.u32 (!%p221_p1), %s859_s7, 5 }
  0x28   : > { %s227_s9 = scalar_lea.sflag (!%p221_p1), [#allocation3], %s859_s7  ;;  %s230_s11 = scalar_lea.vmem (!%p221_p1), [#allocation2], %s537_s8 }
  0x2c   : > { %713 = dma.done.wait (%p824_p8), %s227_s9, 512  }
  0x2d   : > { %715 = vsyncadd (%p824_p8), %s227_s9, 4294966784  ;;  %v748_v0 = vmov 0.0   ;;  %vm749_vm0 = vmmov 0   ;;  %v750_v1 = vmov 0   ;;  %s542_s10 = sshll.u32 %s734_s18, 7  ;;  %v281_v3 = vld [vmem:[%s230_s11 + $0x18] sm:$0xff]  ;;  %v384_v17 = vlaneseq }
  0x2e   : > { %552 = vmatprep.subr.mxu0 %v748_v0  ;;  %560 = vmatprep.mubr.msk.f32.mxu0 %vm749_vm0, %v748_v0  ;;  %v382_v2 = vstv %s542_s10  ;;  %v280_v4 = vld [vmem:[%s230_s11 + $0x10] sm:$0xff]  ;;  %v380_v5 = vld [vmem:[%s929_s0] sm:$0xff]  ;;  %v279_v6 = vld [vmem:[%s230_s11 + $0x8] sm:$0xff]  ;;  %vm282_vm1 = vcmask 261120   ;;  %p274_p8 = scmp.lt.s32.totalorder %s734_s18, 1  ;;  %s538_s25 = sshll.u32 %s859_s7, 3 }
  0x2f   : > { %631 = vset.pattern.permute.xlu0 %v750_v1  ;;  %553 = vmatpush3.msra.mxu0 %v281_v3  ;;  %v383_v7 = vsub.s32 %v380_v5, %v382_v2  ;;  %v278_v8 = vld [vmem:[%s230_s11] sm:$0xff]  ;;  %v385_v21 = vand.u32 127, %v384_v17  ;;  %s265_s5 = scalar_lea.vmem [#allocation5], %s538_s25  ;;  %s887_s11 = scalar_lea.hbm %s933_s4, %s542_s10 }
  0x30   : > { %554 = vmatprep.subr.mxu0 %v748_v0  ;;  %v277_v9 = vld [vmem:[%s930_s1] sm:$0xff]  ;;  %s275_s21 = scalar_select %p274_p8, %s734_s18, 1 }
  0x31   : > { %555 = vmatpush3.msra.mxu0 %v280_v4  ;;  %387 = vperm.xlu0 %631, %v383_v7   ;;  %s409_s6 = sshll.u32 %s265_s5, 4  ;;  %s394_s12 = scalar_lea.sflag [#allocation4], %s859_s7  ;;  %s410_s6 = int_to_ptr.vmem [resolvable:$true] %s409_s6 }
  0x32   : > { %556 = vmatprep.subr.mxu0 %v748_v0  ;;  %s276_s26 = scalar_lea.vmem %s932_s3, %s275_s21  ;;  %s662_s13 = scalar_lea.vmem %s410_s6, 128 }
  0x33   : > { %557 = vmatpush3.msra.mxu0 %v279_v6  ;;  %v540_v10 = vld [vmem:[%s276_s26] ss:$0 sm:$0xff]  ;;  %p663_p12 = scmp.ne.s32.totalorder %s410_s6, %s662_s13  ;;  %s751_s27 = smov [#allocation5]  }
  0x34   : > { %558 = vmatprep.subr.mxu0 %v748_v0  ;;  %s666_s14 = sshll.u32 %s751_s27, 4  ;;  %s667_s14 = int_to_ptr.vmem [resolvable:$false] %s666_s14 }
  0x35   : > { %559 = vmatpush3.msra.mxu0 %v278_v8  ;;  %p664_p0 = pnand %p663_p12, %p828_p9  ;;  %s668_s21 = scalar_lea.vmem %s667_s14, 256 }
  0x36   : > { %561 = vmatmul.mubr.msk.f32.vlgmr.msra.gmra.mxu0 %vm282_vm1, %v277_v9  ;;  %p669_p3 = scmp.lt.s32.totalorder %s410_s6, %s667_s14  ;;  %p670_p5 = scmp.lt.s32.totalorder %s668_s21, %s662_s13 }
  0x37   : > { %p665_p2 = pneg %p664_p0 }
  0x38   : > { %p671_p6 = por %p670_p5, %p669_p3 }
  0x3a   : > { %p672_p7 = pnand %p671_p6, %p665_p2 }
  0xac   : > { %v388_v23 = vpop.permute.xlu0 %387 }
  0xad   : > { %vm389_vm4 = vcmp.eq.s32.totalorder %v385_v21, %v388_v23 }
  0xf6   : > { %v352_v11 = vpop.f32.mrf.mxu0 }
  0xf7   : > { %v363_v12 = vmul.f32 %v540_v10, %v352_v11 }
  0xf8   : > { %v562_v13 = vpop.f32.mrf.mxu0 }
  0xf9   : > { %v364_v14 = vmul.f32 %v363_v12, %v363_v12  ;;  %v374_v25 = vmul.f32 0.87758255, %v363_v12  ;;  %v541_v28 = vadd.f32 -0.23971277, %v363_v12  ;;  %vm377_vm5 = vcmp.gt.f32.partialorder %v363_v12, -0.87758255 }
  0xfb   : > { %v365_v15 = vsub.f32 1.0, %v364_v14 }
  0xfd   : > { %v366_v16 = vmax.f32 %v365_v15, 0.0 }
  0xff   : > { %632 = vrsqrt.f32 %v366_v16  ;;  %vm369_vm2 = vcmp.eq.f32.partialorder %v366_v16, inf  ;;  %v372_v20 = vand.u32 2147483648, %v366_v16  ;;  %vm371_vm3 = vcmp.eq.f32.partialorder %v366_v16, 0.0 }
 0x10c   : > { %v633_v18 = vpop.eup %632 }
 0x10d   : > { %v368_v19 = vmul.f32 %v633_v18, %v366_v16 }
 0x10f   : > { %v370_v22 = vsel %vm369_vm2, %v366_v16, %v368_v19 }
 0x110   : > { %v373_v24 = vsel %vm371_vm3, %v372_v20, %v370_v22 }
 0x111   : > { %v375_v26 = vmul.f32 0.47942555, %v373_v24 }
 0x113   : > { %v376_v27 = vsub.f32 %v374_v25, %v375_v26 }
 0x115   : > { %v379_v29 = vsel %vm377_vm5, %v376_v27, %v541_v28 }
 0x116   : > { %v390_v30 = vsel %vm389_vm4, %v379_v29, %v363_v12 }
 0x117   : > { %v391_v31 = vmul.f32 64.0, %v390_v30 }
 0x119   : > { %392 = vst [vmem:[%s265_s5] sm:$0xff] %v391_v31 }
 0x11a   : > { %675 = shalt.err (!%p672_p7)
}
 0x11b   : > { %s676_s18 = scalar_lea.hbm %s887_s11, 128  ;;  %s680_s22 = scalar_lea.hbm %s933_s4, 256 }
 0x11c   : > { %p677_p10 = scmp.ne.s32.totalorder %s887_s11, %s676_s18  ;;  %p681_p1 = scmp.lt.s32.totalorder %s887_s11, %s933_s4 }
 0x11d   : > { %p682_p8 = scmp.lt.s32.totalorder %s680_s22, %s676_s18 }
 0x11e   : > { %p678_p4 = pnand %p677_p10, %p828_p9 }
 0x11f   : > { %p683_p12 = por %p682_p8, %p681_p1 }
 0x120   : > { %p679_p13 = pneg %p678_p4 }
 0x122   : > { %p684_p0 = pnand %p683_p12, %p679_p13 }
 0x124   : > { %687 = shalt.err (!%p684_p0)
}
 0x125   : > { %565 = dma.vmem_to_hbm [thread:$0]  (%p828_p9), %s410_s6, 128, %s887_s11, %s394_s12  }
 0x126 PF: > { %s421_s25 = sand.u32 1, %s722_s15   ;;  %p939_p2 = scmp.ge.s32.totalorder %s742_s20, 2 }
 0x127   : > { %s422_s5 = scalar_lea.sflag [#allocation4], %s421_s25 }
 0x128   : > { %p572_p3 = pnand %p939_p2, %p835_p11 }
 0x12a   : > { %p573_p5 = pneg %p572_p3 }
 0x12c   : > { %717 = dma.done.wait (%p573_p5), %s422_s5, 128  }
 0x12d   : > { %719 = vsyncadd (%p573_p5), %s422_s5, 4294967168  ;;  %s20_s20 = sadd.s32 1, %s742_s20   ;;  %s940_s15 = smov %s726_s16 }
 0x12e   : > { %p17_p6 = scmp.ge.s32.totalorder %s20_s20, 4   ;;  %s941_s16 = smov %s730_s17 }
 0x12f   : > { %s942_s17 = smov %s833_s29  ;;  %s943_s18 = smov %s738_s19 }
 0x130   : > { %s944_s19 = smov %s946_s23  ;;  %19 = sbr.rel (!%p17_p6) target bundleno = 6 (0x6), region = 90 }
 0x135   :  { %427 = vsyncpa [#allocation3], 1 }
 0x136   :  { %429 = vsyncpa [#allocation3 + $0x1], 1 }
 0x137   :  { %430 = vsyncpa [#allocation4], 1 }
 0x138   :  { %432 = vsyncpa [#allocation4 + $0x1], 1 }

</bundles_post_ra>
